<compile_context>
chip_gen: v7x
topology: tpu7x:2x2x1
jax: 0.10.0
libtpu: 0.0.40
codegen_flags: <defaults>
</compile_context>

<pallas_src>
import functools
import math

import jax
import jax.numpy as jnp
from jax.experimental import pallas as pl
from jax.experimental.pallas import tpu as pltpu

VMEM = pl.BlockSpec(memory_space=pltpu.MemorySpace.VMEM)
_LN_EPS = 1e-5


# ------------------------------------------------------------------ in-kernel helpers
def _layernorm(z, g, b):
    mu = jnp.mean(z, axis=-1, keepdims=True)
    var = jnp.mean(jnp.square(z - mu), axis=-1, keepdims=True)
    return (z - mu) * jax.lax.rsqrt(var + _LN_EPS) * g + b


def _pad_lanes(y, width):
    """Pad the last (lane) dim with zeros so the store is lane-dense (>=128 wide)."""
    pad = width - y.shape[-1]
    if pad <= 0:
        return y
    return jnp.concatenate([y, jnp.zeros(y.shape[:-1] + (pad,), y.dtype)], axis=-1)


def _mha(qp, kp, vp, bias, wo, bo, nhead, scale):
    """Batched-head attention: (Tq,E),(Tk,E),(Tk,E) projections -> (Tq,E) output.

    Heads are stacked into (H, T, dh) tensors once, scores / softmax / P@V run as
    batched ops, and the merged context goes through ONE wide output projection.
    """
    tq, e = qp.shape
    dh = e // nhead
    split = lambda m: jnp.stack([m[:, h * dh:(h + 1) * dh] for h in range(nhead)], axis=0)
    qh, kh, vh = split(qp), split(kp), split(vp)                       # (H, T, dh)
    s = jnp.einsum('hqd,hkd->hqk', qh, kh,
                   preferred_element_type=jnp.float32) * scale         # (H, Tq, Tk)
    s = s + bias                                    # key-padding bias added ONCE
    s = s - jnp.max(s, axis=-1, keepdims=True)
    ex = jnp.exp(s)
    p = ex * pl.reciprocal(jnp.sum(ex, axis=-1, keepdims=True), approx=True)
    ctx = jnp.einsum('hqk,hkd->hqd', p, vh,
                     preferred_element_type=jnp.float32)               # (H, Tq, dh)
    ctx = jnp.concatenate([ctx[h] for h in range(nhead)], axis=-1)     # (Tq, E)
    return jnp.dot(ctx, wo, preferred_element_type=jnp.float32) + bo   # ONE out-proj


# --------------------------------------------------------------- molecule-branch kernel
def _gcn_mol_kernel(a_ref, x_ref, w1_ref, b1_ref, w2_ref, b2_ref, w3_ref, b3_ref,
                    pool_ref, h1w_ref, h1b_ref, h2w_ref, h2b_ref, g_ref, beta_ref,
                    molx_ref, gemb_ref):
    """3 fused GCN layers (A_hat @ (X W) + b, relu on 1&2) + mean pool + mol head."""
    a = a_ref[...]
    h = jnp.dot(x_ref[...], w1_ref[...], preferred_element_type=jnp.float32)
    h = jnp.maximum(jnp.dot(a, h, preferred_element_type=jnp.float32) + b1_ref[...], 0.0)
    h = jnp.dot(h, w2_ref[...], preferred_element_type=jnp.float32)
    h = jnp.maximum(jnp.dot(a, h, preferred_element_type=jnp.float32) + b2_ref[...], 0.0)
    h = jnp.dot(h, w3_ref[...], preferred_element_type=jnp.float32)
    mol_x = jnp.dot(a, h, preferred_element_type=jnp.float32) + b3_ref[...]
    molx_ref[...] = mol_x

    pooled = jnp.dot(pool_ref[...], mol_x, preferred_element_type=jnp.float32)  # (G, ghc)
    hh = jnp.maximum(
        jnp.dot(pooled, h1w_ref[...], preferred_element_type=jnp.float32) + h1b_ref[...],
        0.0)
    y = jnp.dot(hh, h2w_ref[...], preferred_element_type=jnp.float32) + h2b_ref[...]
    y = _layernorm(y, g_ref[...], beta_ref[...])      # exp(temp) pre-folded into g/beta
    gemb_ref[...] = _pad_lanes(y, gemb_ref.shape[-1])


def gcn_mol_head(a_hat, x, params, pool, ln_g, ln_b, out_pad):
    n = x.shape[0]
    ghc = params["conv1_w"].shape[1]
    g = pool.shape[0]
    return pl.pallas_call(
        _gcn_mol_kernel,
        out_shape=(jax.ShapeDtypeStruct((n, ghc), jnp.float32),
                   jax.ShapeDtypeStruct((g, out_pad), jnp.float32)),
        in_specs=[VMEM] * 15,
        out_specs=(VMEM, VMEM),
    )(a_hat, x,
      params["conv1_w"], params["conv1_b"].reshape(1, -1),
      params["conv2_w"], params["conv2_b"].reshape(1, -1),
      params["conv3_w"], params["conv3_b"].reshape(1, -1),
      pool,
      params["mol_h1_w"], params["mol_h1_b"].reshape(1, -1),
      params["mol_h2_w"], params["mol_h2_b"].reshape(1, -1),
      ln_g.reshape(1, -1), ln_b.reshape(1, -1))


# ------------------------------------------------------ fused decoder-stack + text head
def _decoder_text_kernel(x_ref, mem_ref, tbias_ref, mbias_ref,
                         sa_wqkv_ref, sa_bqkv_ref, sa_wo_ref, sa_bo_ref,
                         ca_wq_ref, ca_bq_ref, ca_wkv_ref, ca_bkv_ref,
                         ca_wo_ref, ca_bo_ref,
                         ff_w1_ref, ff_b1_ref, ff_w2_ref, ff_b2_ref,
                         n1g_ref, n1b_ref, n2g_ref, n2b_ref, n3g_ref, n3b_ref,
                         thw1_ref, thb1_ref, thw2_ref, thb2_ref,
                         ln2g_ref, ln2b_ref,
                         out_ref, *, nhead, nlayers, scale):
    """One batch item: full post-norm TransformerDecoder stack + text embedding head."""
    x = x_ref[0]                    # (T, E) -- running residual stream
    mem = mem_ref[0]                # (L, E)
    tbias = tbias_ref[0]            # (1, T)
    mbias = mbias_ref[0]            # (1, L)
    e = x.shape[-1]

    for l in range(nlayers):
        # --- self-attention: single wide (E,3E) QKV matmul, batched heads, post-LN ---
        qkv = jnp.dot(x, sa_wqkv_ref[l],
                      preferred_element_type=jnp.float32) + sa_bqkv_ref[l]   # (T, 3E)
        sa = _mha(qkv[:, :e], qkv[:, e:2 * e], qkv[:, 2 * e:], tbias,
                  sa_wo_ref[l], sa_bo_ref[l], nhead, scale)
        x = _layernorm(x + sa, n1g_ref[l], n1b_ref[l])

        # --- cross-attention over molecule memory (one E-wide Q, one 2E-wide KV) ---
        qp = jnp.dot(x, ca_wq_ref[l],
                     preferred_element_type=jnp.float32) + ca_bq_ref[l]      # (T, E)
        kvp = jnp.dot(mem, ca_wkv_ref[l],
                      preferred_element_type=jnp.float32) + ca_bkv_ref[l]    # (L, 2E)
        ca = _mha(qp, kvp[:, :e], kvp[:, e:], mbias,
                  ca_wo_ref[l], ca_bo_ref[l], nhead, scale)
        x = _layernorm(x + ca, n2g_ref[l], n2b_ref[l])

        # --- feed-forward (relu), residual, post-LN ---
        h = jnp.maximum(
            jnp.dot(x, ff_w1_ref[l], preferred_element_type=jnp.float32) + ff_b1_ref[l],
            0.0)
        ff = jnp.dot(h, ff_w2_ref[l], preferred_element_type=jnp.float32) + ff_b2_ref[l]
        x = _layernorm(x + ff, n3g_ref[l], n3b_ref[l])

    # --- text embedding head on the first decoder position (text_output[0]) ---
    t0 = x[0:1, :]                                                           # (1, E)
    h = jnp.tanh(jnp.dot(t0, thw1_ref[...],
                         preferred_element_type=jnp.float32) + thb1_ref[...])
    y = jnp.dot(h, thw2_ref[...], preferred_element_type=jnp.float32) + thb2_ref[...]
    y = _layernorm(y, ln2g_ref[...], ln2b_ref[...])   # exp(temp) pre-folded into g/b
    out_ref[0] = _pad_lanes(y, out_ref.shape[-1])     # lane-dense (1, 128) store


def decoder_text_head(hidden, memory, tgt_bias, mem_bias, params, ln2_g, ln2_b,
                      nhead, out_pad):
    b, t, e = hidden.shape
    lmem = memory.shape[1]
    dec = params["decoder"]
    nlayers = dec["sa_wqkv"].shape[0]
    dh = e // nhead

    weights = [
        dec["sa_wqkv"], dec["sa_bqkv"], dec["sa_wo"], dec["sa_bo"],
        dec["ca_wq"], dec["ca_bq"], dec["ca_wkv"], dec["ca_bkv"],
        dec["ca_wo"], dec["ca_bo"],
        dec["ff_w1"], dec["ff_b1"], dec["ff_w2"], dec["ff_b2"],
        dec["n1_g"], dec["n1_b"], dec["n2_g"], dec["n2_b"], dec["n3_g"], dec["n3_b"],
        params["text_h1_w"], params["text_h1_b"].reshape(1, -1),
        params["text_h2_w"], params["text_h2_b"].reshape(1, -1),
        ln2_g.reshape(1, -1), ln2_b.reshape(1, -1),
    ]

    def full_spec(a):
        return pl.BlockSpec(a.shape, lambda i: (0,) * a.ndim)

    return pl.pallas_call(
        functools.partial(_decoder_text_kernel, nhead=nhead, nlayers=nlayers,
                          scale=1.0 / math.sqrt(dh)),
        out_shape=jax.ShapeDtypeStruct((b, 1, out_pad), jnp.float32),
        grid=(b,),
        in_specs=[
            pl.BlockSpec((1, t, e), lambda i: (i, 0, 0)),      # text hidden / residual
            pl.BlockSpec((1, lmem, e), lambda i: (i, 0, 0)),   # molecule memory
            pl.BlockSpec((1, 1, t), lambda i: (i, 0, 0)),      # tgt key-padding bias
            pl.BlockSpec((1, 1, lmem), lambda i: (i, 0, 0)),   # memory key-padding bias
        ] + [full_spec(a) for a in weights],
        out_specs=pl.BlockSpec((1, 1, out_pad), lambda i: (i, 0, 0)),
        compiler_params=pltpu.CompilerParams(dimension_semantics=("parallel",)),
    )(hidden, memory, tgt_bias, mem_bias, *weights)


# -------------------------------------------------------------------- XLA-side glue
def gcn_norm_adj(edge_index, num_nodes):
    src, dst = edge_index[0], edge_index[1]
    a = jnp.zeros((num_nodes, num_nodes), jnp.float32).at[dst, src].add(1.0)
    a = a + jnp.eye(num_nodes, dtype=jnp.float32)            # add self loops
    deg = jnp.sum(a, axis=1)
    dinv = jax.lax.rsqrt(deg)
    return a * dinv[:, None] * dinv[None, :]


def mean_pool_matrix(batch, num_graphs):
    one_hot = (batch[None, :] == jnp.arange(num_graphs)[:, None]).astype(jnp.float32)
    counts = jnp.sum(one_hot, axis=1, keepdims=True)
    return one_hot / jnp.maximum(counts, 1.0)


def build_node_features(mol_x, ptr, mol_trunc):
    # node_features[i, :count_i, :] = mol_x[ptr[i] : min(ptr[i+1], ptr[i]+mol_trunc)]
    counts = ptr[1:] - ptr[:-1]                               # (G,)
    j = jnp.arange(mol_trunc)
    idx = ptr[:-1, None] + j[None, :]                         # (G, L)
    valid = j[None, :] < jnp.minimum(counts[:, None], mol_trunc)
    gathered = mol_x[jnp.clip(idx, 0, mol_x.shape[0] - 1)]    # (G, L, C)
    return jnp.where(valid[:, :, None], gathered, 0.0)


def attention_model_forward(params, text, text_mask, graph_x, a_hat, batch, ptr,
                            molecule_mask, nhead, mol_trunc):
    nout = params["ln1_g"].shape[0]
    out_pad = max(128, -(-nout // 128) * 128)                 # lane-dense store width

    # ---- text encoder (TODO(synk): SciBERT replaced by embedding lookup, see header) ----
    last_hidden = params["bert_emb"][text]                    # (B, T, E), batch-first

    # exp(temp) folded into the final LayerNorm affine params (identical math).
    scale = jnp.exp(params["temp"])[0]
    ln1_g, ln1_b = params["ln1_g"] * scale, params["ln1_b"] * scale
    ln2_g, ln2_b = params["ln2_g"] * scale, params["ln2_b"] * scale

    # ---- molecule branch: GCN x3 + mean pool + embedding head in ONE pallas_call ----
    num_graphs = ptr.shape[0] - 1
    pool = mean_pool_matrix(batch, num_graphs)                # (G, N)
    mol_x, g_emb_pad = gcn_mol_head(a_hat, graph_x, params, pool, ln1_g, ln1_b, out_pad)
    g_emb = g_emb_pad[:, :nout]

    memory = build_node_features(mol_x, ptr, mol_trunc)       # (G, L, C), batch-first

    # ---- key-padding biases, (B, 1, Tk): broadcast happens once inside the kernel ----
    neg = jnp.float32(-1e9)
    tgt_bias = jnp.where(text_mask == 0, neg, 0.0).astype(jnp.float32)[:, None, :]
    mem_bias = jnp.where(~molecule_mask, neg, 0.0).astype(jnp.float32)[:, None, :]

    # ---- full decoder stack + text head in ONE pallas_call, grid over batch ----
    text_emb_pad = decoder_text_head(last_hidden, memory, tgt_bias, mem_bias,
                                     params, ln2_g, ln2_b, nhead, out_pad)
    text_emb = text_emb_pad[:, 0, :nout]
    return text_emb, g_emb


# ------------------------------------------------------------------------ param init
def init_params(key, ninp, nhid, nout, nlayers, num_node_features, ghc, vocab, temp):
    keys = iter(jax.random.split(key, 64))

    def w(shape):
        return 0.1 * jax.random.normal(next(keys), shape, jnp.float32)

    zeros = lambda s: jnp.zeros(s, jnp.float32)
    ones = lambda s: jnp.ones(s, jnp.float32)

    dec = {
        "sa_wqkv": w((nlayers, ninp, 3 * ninp)), "sa_bqkv": zeros((nlayers, 1, 3 * ninp)),
        "sa_wo": w((nlayers, ninp, ninp)), "sa_bo": zeros((nlayers, 1, ninp)),
        "ca_wq": w((nlayers, ninp, ninp)), "ca_bq": zeros((nlayers, 1, ninp)),
        "ca_wkv": w((nlayers, ninp, 2 * ninp)), "ca_bkv": zeros((nlayers, 1, 2 * ninp)),
        "ca_wo": w((nlayers, ninp, ninp)), "ca_bo": zeros((nlayers, 1, ninp)),
        "ff_w1": w((nlayers, ninp, nhid)), "ff_b1": zeros((nlayers, 1, nhid)),
        "ff_w2": w((nlayers, nhid, ninp)), "ff_b2": zeros((nlayers, 1, ninp)),
        "n1_g": ones((nlayers, 1, ninp)), "n1_b": zeros((nlayers, 1, ninp)),
        "n2_g": ones((nlayers, 1, ninp)), "n2_b": zeros((nlayers, 1, ninp)),
        "n3_g": ones((nlayers, 1, ninp)), "n3_b": zeros((nlayers, 1, ninp)),
    }
    return {
        "bert_emb": w((vocab, ninp)),
        "conv1_w": w((num_node_features, ghc)), "conv1_b": zeros((ghc,)),
        "conv2_w": w((ghc, ghc)), "conv2_b": zeros((ghc,)),
        "conv3_w": w((ghc, ghc)), "conv3_b": zeros((ghc,)),
        "mol_h1_w": w((ghc, nhid)), "mol_h1_b": zeros((nhid,)),
        "mol_h2_w": w((nhid, nout)), "mol_h2_b": zeros((nout,)),
        "text_h1_w": w((ninp, nhid)), "text_h1_b": zeros((nhid,)),
        "text_h2_w": w((nhid, nout)), "text_h2_b": zeros((nout,)),
        "ln1_g": ones((nout,)), "ln1_b": zeros((nout,)),
        "ln2_g": ones((nout,)), "ln2_b": zeros((nout,)),
        "temp": jnp.asarray([temp], jnp.float32),
        "decoder": dec,
    }


# --------------------------------------------------------------------------- driver
if __name__ == "__main__":
    ninp = 32
    nhid = 32
    nout = 16
    nhead = 4
    nlayers = 2
    num_node_features = 4
    graph_hidden_channels = 32      # must equal ninp (decoder memory width)
    mol_trunc_length = 8
    temp = 0.07
    vocab = 64

    B = 2                           # batch size == num_graphs
    T = 8                           # text sequence length
    N_nodes = 10                    # two graphs of 5 nodes

    key = jax.random.PRNGKey(0)
    k_params, k_text, k_nodes = jax.random.split(key, 3)

    params = init_params(k_params, ninp, nhid, nout, nlayers,
                         num_node_features, graph_hidden_channels, vocab, temp)

    text = jax.random.randint(k_text, (B, T), 0, vocab)
    text_mask = jnp.array([[1] * T, [1] * 6 + [0] * 2], jnp.int32)          # (B, T)

    graph_x = jax.random.normal(k_nodes, (N_nodes, num_node_features), jnp.float32)
    edges = []
    for base in (0, 5):                                                     # two 5-node rings
        for i in range(5):
            a, c = base + i, base + (i + 1) % 5
            edges.append((a, c))
            edges.append((c, a))
    edge_index = jnp.asarray(edges, jnp.int32).T                            # (2, 20)
    batch = jnp.asarray([0] * 5 + [1] * 5, jnp.int32)
    ptr = jnp.asarray([0, 5, 10], jnp.int32)
    molecule_mask = jnp.zeros((B, mol_trunc_length), bool).at[:, :5].set(True)

    a_hat = gcn_norm_adj(edge_index, N_nodes)

    text_x, mol_x_emb = attention_model_forward(
        params, text, text_mask, graph_x, a_hat, batch, ptr,
        molecule_mask, nhead, mol_trunc_length)
    jax.block_until_ready((text_x, mol_x_emb))

    assert text_x.shape == (B, nout) and mol_x_emb.shape == (B, nout)
    assert bool(jnp.all(jnp.isfinite(text_x))) and bool(jnp.all(jnp.isfinite(mol_x_emb)))
    print("KERNEL_OK")
</pallas_src>

<mosaic_0001>
module attributes {stable_mosaic.version = 11 : i64} {
  func.func @_gcn_mol_kernel(%arg0: memref<10x10xf32, #tpu.memory_space<vmem>>, %arg1: memref<10x4xf32, #tpu.memory_space<vmem>>, %arg2: memref<4x32xf32, #tpu.memory_space<vmem>>, %arg3: memref<1x32xf32, #tpu.memory_space<vmem>>, %arg4: memref<32x32xf32, #tpu.memory_space<vmem>>, %arg5: memref<1x32xf32, #tpu.memory_space<vmem>>, %arg6: memref<32x32xf32, #tpu.memory_space<vmem>>, %arg7: memref<1x32xf32, #tpu.memory_space<vmem>>, %arg8: memref<2x10xf32, #tpu.memory_space<vmem>>, %arg9: memref<32x32xf32, #tpu.memory_space<vmem>>, %arg10: memref<1x32xf32, #tpu.memory_space<vmem>>, %arg11: memref<32x16xf32, #tpu.memory_space<vmem>>, %arg12: memref<1x16xf32, #tpu.memory_space<vmem>>, %arg13: memref<1x16xf32, #tpu.memory_space<vmem>>, %arg14: memref<1x16xf32, #tpu.memory_space<vmem>>, %arg15: memref<10x32xf32, #tpu.memory_space<vmem>>, %arg16: memref<2x128xf32, #tpu.memory_space<vmem>>) attributes {dimension_semantics = [], scalar_prefetch = 0 : i64, scratch_operands = 0 : i64, tpu.core_type = #tpu.core_type<tc>} {
    %c0 = arith.constant 0 : index
    %c0_0 = arith.constant 0 : index
    %0 = vector.load %arg0[%c0, %c0_0] : memref<10x10xf32, #tpu.memory_space<vmem>>, vector<10x10xf32>
    %c0_1 = arith.constant 0 : index
    %c0_2 = arith.constant 0 : index
    %1 = vector.load %arg1[%c0_1, %c0_2] : memref<10x4xf32, #tpu.memory_space<vmem>>, vector<10x4xf32>
    %c0_3 = arith.constant 0 : index
    %c0_4 = arith.constant 0 : index
    %2 = vector.load %arg2[%c0_3, %c0_4] : memref<4x32xf32, #tpu.memory_space<vmem>>, vector<4x32xf32>
    %cst = arith.constant dense<0.000000e+00> : vector<10x32xf32>
    %3 = tpu.matmul %1, %2, %cst {dimension_numbers = #tpu.dot_dimension_numbers<[1], [0], [0], [1], [0, 0, 1, 1], [], []>} : vector<10x4xf32>, vector<4x32xf32>, vector<10x32xf32> -> vector<10x32xf32>
    %cst_5 = arith.constant dense<0.000000e+00> : vector<10x32xf32>
    %4 = tpu.matmul %0, %3, %cst_5 {dimension_numbers = #tpu.dot_dimension_numbers<[1], [0], [0], [1], [0, 0, 1, 1], [], []>} : vector<10x10xf32>, vector<10x32xf32>, vector<10x32xf32> -> vector<10x32xf32>
    %c0_6 = arith.constant 0 : index
    %c0_7 = arith.constant 0 : index
    %5 = vector.load %arg3[%c0_6, %c0_7] : memref<1x32xf32, #tpu.memory_space<vmem>>, vector<1x32xf32>
    %6 = vector.broadcast %5 : vector<1x32xf32> to vector<10x32xf32>
    %7 = arith.addf %4, %6 : vector<10x32xf32>
    %cst_8 = arith.constant 0.000000e+00 : f32
    %8 = vector.broadcast %cst_8 : f32 to vector<10x32xf32>
    %9 = arith.maximumf %7, %8 : vector<10x32xf32>
    %c0_9 = arith.constant 0 : index
    %c0_10 = arith.constant 0 : index
    %10 = vector.load %arg4[%c0_9, %c0_10] : memref<32x32xf32, #tpu.memory_space<vmem>>, vector<32x32xf32>
    %cst_11 = arith.constant dense<0.000000e+00> : vector<10x32xf32>
    %11 = tpu.matmul %9, %10, %cst_11 {dimension_numbers = #tpu.dot_dimension_numbers<[1], [0], [0], [1], [0, 0, 1, 1], [], []>} : vector<10x32xf32>, vector<32x32xf32>, vector<10x32xf32> -> vector<10x32xf32>
    %cst_12 = arith.constant dense<0.000000e+00> : vector<10x32xf32>
    %12 = tpu.matmul %0, %11, %cst_12 {dimension_numbers = #tpu.dot_dimension_numbers<[1], [0], [0], [1], [0, 0, 1, 1], [], []>} : vector<10x10xf32>, vector<10x32xf32>, vector<10x32xf32> -> vector<10x32xf32>
    %c0_13 = arith.constant 0 : index
    %c0_14 = arith.constant 0 : index
    %13 = vector.load %arg5[%c0_13, %c0_14] : memref<1x32xf32, #tpu.memory_space<vmem>>, vector<1x32xf32>
    %14 = vector.broadcast %13 : vector<1x32xf32> to vector<10x32xf32>
    %15 = arith.addf %12, %14 : vector<10x32xf32>
    %cst_15 = arith.constant 0.000000e+00 : f32
    %16 = vector.broadcast %cst_15 : f32 to vector<10x32xf32>
    %17 = arith.maximumf %15, %16 : vector<10x32xf32>
    %c0_16 = arith.constant 0 : index
    %c0_17 = arith.constant 0 : index
    %18 = vector.load %arg6[%c0_16, %c0_17] : memref<32x32xf32, #tpu.memory_space<vmem>>, vector<32x32xf32>
    %cst_18 = arith.constant dense<0.000000e+00> : vector<10x32xf32>
    %19 = tpu.matmul %17, %18, %cst_18 {dimension_numbers = #tpu.dot_dimension_numbers<[1], [0], [0], [1], [0, 0, 1, 1], [], []>} : vector<10x32xf32>, vector<32x32xf32>, vector<10x32xf32> -> vector<10x32xf32>
    %cst_19 = arith.constant dense<0.000000e+00> : vector<10x32xf32>
    %20 = tpu.matmul %0, %19, %cst_19 {dimension_numbers = #tpu.dot_dimension_numbers<[1], [0], [0], [1], [0, 0, 1, 1], [], []>} : vector<10x10xf32>, vector<10x32xf32>, vector<10x32xf32> -> vector<10x32xf32>
    %c0_20 = arith.constant 0 : index
    %c0_21 = arith.constant 0 : index
    %21 = vector.load %arg7[%c0_20, %c0_21] : memref<1x32xf32, #tpu.memory_space<vmem>>, vector<1x32xf32>
    %22 = vector.broadcast %21 : vector<1x32xf32> to vector<10x32xf32>
    %23 = arith.addf %20, %22 : vector<10x32xf32>
    %c0_22 = arith.constant 0 : index
    %c0_23 = arith.constant 0 : index
    %24 = vector.load %arg15[%c0_22, %c0_23] : memref<10x32xf32, #tpu.memory_space<vmem>>, vector<10x32xf32>
    tpu.vector_store %arg15[%c0_22, %c0_23], %23 {strides = array<i32>} : memref<10x32xf32, #tpu.memory_space<vmem>>, vector<10x32xf32>,
    %c0_24 = arith.constant 0 : index
    %c0_25 = arith.constant 0 : index
    %25 = vector.load %arg8[%c0_24, %c0_25] : memref<2x10xf32, #tpu.memory_space<vmem>>, vector<2x10xf32>
    %cst_26 = arith.constant dense<0.000000e+00> : vector<2x32xf32>
    %26 = tpu.matmul %25, %23, %cst_26 {dimension_numbers = #tpu.dot_dimension_numbers<[1], [0], [0], [1], [0, 0, 1, 1], [], []>} : vector<2x10xf32>, vector<10x32xf32>, vector<2x32xf32> -> vector<2x32xf32>
    %c0_27 = arith.constant 0 : index
    %c0_28 = arith.constant 0 : index
    %27 = vector.load %arg9[%c0_27, %c0_28] : memref<32x32xf32, #tpu.memory_space<vmem>>, vector<32x32xf32>
    %cst_29 = arith.constant dense<0.000000e+00> : vector<2x32xf32>
    %28 = tpu.matmul %26, %27, %cst_29 {dimension_numbers = #tpu.dot_dimension_numbers<[1], [0], [0], [1], [0, 0, 1, 1], [], []>} : vector<2x32xf32>, vector<32x32xf32>, vector<2x32xf32> -> vector<2x32xf32>
    %c0_30 = arith.constant 0 : index
    %c0_31 = arith.constant 0 : index
    %29 = vector.load %arg10[%c0_30, %c0_31] : memref<1x32xf32, #tpu.memory_space<vmem>>, vector<1x32xf32>
    %30 = vector.broadcast %29 : vector<1x32xf32> to vector<2x32xf32>
    %31 = arith.addf %28, %30 : vector<2x32xf32>
    %cst_32 = arith.constant 0.000000e+00 : f32
    %32 = vector.broadcast %cst_32 : f32 to vector<2x32xf32>
    %33 = arith.maximumf %31, %32 : vector<2x32xf32>
    %c0_33 = arith.constant 0 : index
    %c0_34 = arith.constant 0 : index
    %34 = vector.load %arg11[%c0_33, %c0_34] : memref<32x16xf32, #tpu.memory_space<vmem>>, vector<32x16xf32>
    %cst_35 = arith.constant dense<0.000000e+00> : vector<2x16xf32>
    %35 = tpu.matmul %33, %34, %cst_35 {dimension_numbers = #tpu.dot_dimension_numbers<[1], [0], [0], [1], [0, 0, 1, 1], [], []>} : vector<2x32xf32>, vector<32x16xf32>, vector<2x16xf32> -> vector<2x16xf32>
    %c0_36 = arith.constant 0 : index
    %c0_37 = arith.constant 0 : index
    %36 = vector.load %arg12[%c0_36, %c0_37] : memref<1x16xf32, #tpu.memory_space<vmem>>, vector<1x16xf32>
    %37 = vector.broadcast %36 : vector<1x16xf32> to vector<2x16xf32>
    %38 = arith.addf %35, %37 : vector<2x16xf32>
    %c0_38 = arith.constant 0 : index
    %c0_39 = arith.constant 0 : index
    %39 = vector.load %arg13[%c0_38, %c0_39] : memref<1x16xf32, #tpu.memory_space<vmem>>, vector<1x16xf32>
    %c0_40 = arith.constant 0 : index
    %c0_41 = arith.constant 0 : index
    %40 = vector.load %arg14[%c0_40, %c0_41] : memref<1x16xf32, #tpu.memory_space<vmem>>, vector<1x16xf32>
    %cst_42 = arith.constant dense<0.000000e+00> : vector<2xf32>
    %41 = vector.multi_reduction <add>, %38, %cst_42 [1] : vector<2x16xf32> to vector<2xf32>
    %42 = vector.shape_cast %41 : vector<2xf32> to vector<2x1xf32>
    %cst_43 = arith.constant 1.600000e+01 : f32
    %43 = vector.broadcast %cst_43 : f32 to vector<2x1xf32>
    %44 = arith.divf %42, %43 : vector<2x1xf32>
    %45 = vector.broadcast %44 : vector<2x1xf32> to vector<2x16xf32>
    %46 = arith.subf %38, %45 : vector<2x16xf32>
    %47 = arith.mulf %46, %46 : vector<2x16xf32>
    %cst_44 = arith.constant dense<0.000000e+00> : vector<2xf32>
    %48 = vector.multi_reduction <add>, %47, %cst_44 [1] : vector<2x16xf32> to vector<2xf32>
    %49 = vector.shape_cast %48 : vector<2xf32> to vector<2x1xf32>
    %cst_45 = arith.constant 1.600000e+01 : f32
    %50 = vector.broadcast %cst_45 : f32 to vector<2x1xf32>
    %51 = arith.divf %49, %50 : vector<2x1xf32>
    %52 = vector.broadcast %44 : vector<2x1xf32> to vector<2x16xf32>
    %53 = arith.subf %38, %52 : vector<2x16xf32>
    %cst_46 = arith.constant 9.99999974E-6 : f32
    %54 = vector.broadcast %cst_46 : f32 to vector<2x1xf32>
    %55 = arith.addf %51, %54 : vector<2x1xf32>
    %56 = math.rsqrt %55 : vector<2x1xf32>
    %57 = vector.broadcast %56 : vector<2x1xf32> to vector<2x16xf32>
    %58 = arith.mulf %53, %57 : vector<2x16xf32>
    %59 = vector.broadcast %39 : vector<1x16xf32> to vector<2x16xf32>
    %60 = arith.mulf %58, %59 : vector<2x16xf32>
    %61 = vector.broadcast %40 : vector<1x16xf32> to vector<2x16xf32>
    %62 = arith.addf %60, %61 : vector<2x16xf32>
    %cst_47 = arith.constant 0.000000e+00 : f32
    %63 = vector.broadcast %cst_47 : f32 to vector<2x112xf32>
    %64 = tpu.concatenate %62, %63 in 1 : vector<2x16xf32>, vector<2x112xf32> -> vector<2x128xf32>
    %c0_48 = arith.constant 0 : index
    %c0_49 = arith.constant 0 : index
    %65 = vector.load %arg16[%c0_48, %c0_49] : memref<2x128xf32, #tpu.memory_space<vmem>>, vector<2x128xf32>
    tpu.vector_store %arg16[%c0_48, %c0_49], %64 {strides = array<i32>} : memref<2x128xf32, #tpu.memory_space<vmem>>, vector<2x128xf32>,
    return
  }
}

</mosaic_0001>

<bundles_post_ra>
// kernel: tpu_custom_call.1
= control target key start
LH: loop header
LB: loop body
LE: loop exit
PB: predicated region body
PF: predicated region fallthrough
CT: control target
= control target key end

     0   :  { %s1624_s0 = inlined_call_operand.hbm [shape: f32[10,10], index: 0, kind: input, shape index: {}]   ;;  %s1625_s1 = inlined_call_operand.vmem [shape: f32[10,4], index: 1, kind: input, shape index: {}]   ;;  %s1626_s2 = inlined_call_operand.hbm [shape: f32[4,32], index: 2, kind: input, shape index: {}]   ;;  %s1627_s3 = inlined_call_operand.hbm [shape: f32[1,32], index: 3, kind: input, shape index: {}]   ;;  %s1628_s4 = inlined_call_operand.vmem [shape: f32[32,32], index: 4, kind: input, shape index: {}]   ;;  %s1629_s5 = inlined_call_operand.hbm [shape: f32[1,32], index: 5, kind: input, shape index: {}]   ;;  %s1630_s6 = inlined_call_operand.vmem [shape: f32[32,32], index: 6, kind: input, shape index: {}]   ;;  %s1631_s7 = inlined_call_operand.hbm [shape: f32[1,32], index: 7, kind: input, shape index: {}]   ;;  %s1632_s8 = inlined_call_operand.vmem [shape: f32[2,10], index: 8, kind: input, shape index: {}]   ;;  %s1633_s9 = inlined_call_operand.vmem [shape: f32[32,32], index: 9, kind: input, shape index: {}]   ;;  %s1634_s10 = inlined_call_operand.vmem [shape: f32[1,32], index: 10, kind: input, shape index: {}]   ;;  %s1635_s11 = inlined_call_operand.vmem [shape: f32[32,16], index: 11, kind: input, shape index: {}]   ;;  %s1636_s12 = inlined_call_operand.vmem [shape: f32[1,16], index: 12, kind: input, shape index: {}]   ;;  %s1637_s13 = inlined_call_operand.vmem [shape: f32[1,16], index: 13, kind: input, shape index: {}]   ;;  %s1638_s14 = inlined_call_operand.vmem [shape: f32[1,16], index: 14, kind: input, shape index: {}]   ;;  %s1639_s15 = inlined_call_operand.hbm [shape: f32[10,32], index: 15, kind: output, shape index: {0}]   ;;  %s1640_s16 = inlined_call_operand.hbm [shape: f32[2,128], index: 16, kind: output, shape index: {1}]  }
   0x1   :  { %1642 = sst [smem:[#allocation19_spill]] %s1624_s0 }
   0x2   :  { %22 = vsyncpa [#allocation3], 0 }
   0x3   :  { %23 = vsyncpa [#allocation6], 0 }
   0x4   :  { %24 = vsyncpa [#allocation9], 0 }
   0x5   :  { %25 = vsyncpa [#allocation4], 0 }
   0x6   :  { %26 = vsyncpa [#allocation13], 0  ;;  %s1332_s21 = smov [#allocation5]   ;;  %s1333_s23 = smov [#allocation8]  }
   0x7   :  { %s47_s22 = sshll.u32 %s1332_s21, 4  ;;  %s69_s24 = sshll.u32 %s1333_s23, 4  ;;  %s48_s22 = int_to_ptr.vmem [resolvable:$true] %s47_s22  ;;  %s70_s24 = int_to_ptr.vmem [resolvable:$true] %s69_s24 }
   0x8   :  { %s1168_s27 = scalar_lea.hbm %s1626_s2, 64 }
   0x9   :  { %p1169_p0 = scmp.ne.s32.totalorder %s1626_s2, %s1168_s27  ;;  %p1172_p1 = scmp.lt.u32.totalorder %s1168_s27, %s1626_s2 }
   0xb   :  { %p1174_p2 = pnand %p1172_p1, %p1169_p0 }
   0xd   :  { %1177 = shalt.err (!%p1174_p2)
}
   0xe   :  { %s1178_s17 = scalar_lea.vmem %s48_s22, 64  ;;  %p1183_p4 = scmp.lt.s32.totalorder %s48_s22, %s48_s22 }
   0xf   :  { %p1179_p3 = scmp.ne.s32.totalorder %s48_s22, %s1178_s17  ;;  %p1184_p5 = scmp.lt.s32.totalorder %s1178_s17, %s1178_s17 }
  0x11   :  { %p1185_p6 = por %p1184_p5, %p1183_p4 }
  0x13   :  { %p1186_p7 = pnand %p1185_p6, %p1179_p3 }
  0x15   :  { %1189 = shalt.err (!%p1186_p7)
}
  0x16   :  { %50 = dma.hbm_to_vmem [thread:$0]  %s1626_s2, 64, %s48_s22, [#allocation6]  }
  0x17   :  { %s1190_s23 = scalar_lea.hbm %s1629_s5, 16 }
  0x18   :  { %p1191_p8 = scmp.ne.s32.totalorder %s1629_s5, %s1190_s23  ;;  %p1194_p9 = scmp.lt.u32.totalorder %s1190_s23, %s1629_s5 }
  0x1a   :  { %p1196_p10 = pnand %p1194_p9, %p1191_p8 }
  0x1c   :  { %1199 = shalt.err (!%p1196_p10)
}
  0x1d   :  { %s1200_s29 = scalar_lea.vmem %s70_s24, 16  ;;  %s1204_s30 = scalar_lea.vmem %s70_s24, 32 }
  0x1e   :  { %p1201_p11 = scmp.ne.s32.totalorder %s70_s24, %s1200_s29  ;;  %p1205_p12 = scmp.lt.s32.totalorder %s70_s24, %s70_s24 }
  0x1f   :  { %p1206_p13 = scmp.lt.s32.totalorder %s1204_s30, %s1200_s29 }
  0x21   :  { %p1207_p0 = por %p1206_p13, %p1205_p12 }
  0x23   :  { %p1208_p1 = pnand %p1207_p0, %p1201_p11 }
  0x25   :  { %1211 = shalt.err (!%p1208_p1)
}
  0x26   :  { %72 = dma.hbm_to_vmem [thread:$0]  %s1629_s5, 16, %s70_s24, [#allocation9]  }
  0x27   :  { %s1334_s0 = smov [#allocation2]   ;;  %s1643_s20 = sld [smem:[#allocation19_spill]] }
  0x28   :  { %s32_s17 = sshll.u32 %s1334_s0, 4  ;;  %s33_s17 = int_to_ptr.vmem [resolvable:$true] %s32_s17 }
  0x2d   :  { %s1212_s21 = scalar_lea.hbm %s1643_s20, 256 }
  0x2e   :  { %p1213_p2 = scmp.ne.s32.totalorder %s1643_s20, %s1212_s21  ;;  %p1216_p3 = scmp.lt.u32.totalorder %s1212_s21, %s1643_s20 }
  0x30   :  { %p1218_p4 = pnand %p1216_p3, %p1213_p2 }
  0x32   :  { %1221 = shalt.err (!%p1218_p4)
}
  0x33   :  { %s1222_s28 = scalar_lea.vmem %s33_s17, 256  ;;  %p1227_p6 = scmp.lt.s32.totalorder %s33_s17, %s33_s17 }
  0x34   :  { %p1223_p5 = scmp.ne.s32.totalorder %s33_s17, %s1222_s28  ;;  %p1228_p7 = scmp.lt.s32.totalorder %s1222_s28, %s1222_s28 }
  0x36   :  { %p1229_p8 = por %p1228_p7, %p1227_p6 }
  0x38   :  { %p1230_p9 = pnand %p1229_p8, %p1223_p5 }
  0x3a   :  { %1233 = shalt.err (!%p1230_p9)
}
  0x3b   :  { %s1335_s5 = smov 128   ;;  %s1336_s24 = smov 8  }
  0x3c   :  { %38 = dma.hbm_to_vmem [thread:$0]  %s1643_s20, 256, %s33_s17, [#allocation3], %s1335_s5, %s1335_s5, %s1336_s24  }
  0x3d   :  { %s1337_s2 = smov [#allocation7]   ;;  %s1338_s0 = smov [#allocation10]  }
  0x3e   :  { %s57_s22 = sshll.u32 %s1337_s2, 4  ;;  %s81_s18 = sshll.u32 %s1338_s0, 4  ;;  %s58_s22 = int_to_ptr.vmem [resolvable:$true] %s57_s22  ;;  %s82_s18 = int_to_ptr.vmem [resolvable:$true] %s81_s18 }
  0x3f   :  { %s1234_s23 = scalar_lea.hbm %s1627_s3, 16 }
  0x40   :  { %p1235_p10 = scmp.ne.s32.totalorder %s1627_s3, %s1234_s23  ;;  %p1238_p11 = scmp.lt.u32.totalorder %s1234_s23, %s1627_s3 }
  0x42   :  { %p1240_p12 = pnand %p1238_p11, %p1235_p10 }
  0x44   :  { %1243 = shalt.err (!%p1240_p12)
}
  0x45   :  { %s1244_s17 = scalar_lea.vmem %s58_s22, 16  ;;  %s1248_s20 = scalar_lea.vmem %s58_s22, 32 }
  0x46   :  { %p1245_p13 = scmp.ne.s32.totalorder %s58_s22, %s1244_s17  ;;  %p1249_p0 = scmp.lt.s32.totalorder %s58_s22, %s58_s22 }
  0x47   :  { %p1250_p1 = scmp.lt.s32.totalorder %s1248_s20, %s1244_s17 }
  0x49   :  { %p1251_p2 = por %p1250_p1, %p1249_p0 }
  0x4b   :  { %p1252_p3 = pnand %p1251_p2, %p1245_p13 }
  0x4d   :  { %1255 = shalt.err (!%p1252_p3)
}
  0x4e   :  { %60 = dma.hbm_to_vmem [thread:$0]  %s1627_s3, 16, %s58_s22, [#allocation6]  }
  0x4f   :  { %s1256_s19 = scalar_lea.hbm %s1631_s7, 16 }
  0x50   :  { %p1257_p4 = scmp.ne.s32.totalorder %s1631_s7, %s1256_s19  ;;  %p1260_p5 = scmp.lt.u32.totalorder %s1256_s19, %s1631_s7 }
  0x52   :  { %p1262_p6 = pnand %p1260_p5, %p1257_p4 }
  0x54   :  { %1265 = shalt.err (!%p1262_p6)
}
  0x55   :  { %s1266_s27 = scalar_lea.vmem %s82_s18, 16  ;;  %s1270_s28 = scalar_lea.vmem %s82_s18, 32 }
  0x56   :  { %p1267_p7 = scmp.ne.s32.totalorder %s82_s18, %s1266_s27  ;;  %p1271_p8 = scmp.lt.s32.totalorder %s82_s18, %s82_s18 }
  0x57   :  { %p1272_p9 = scmp.lt.s32.totalorder %s1270_s28, %s1266_s27 }
  0x59   :  { %p1273_p10 = por %p1272_p9, %p1271_p8 }
  0x5b   :  { %p1274_p11 = pnand %p1273_p10, %p1267_p7 }
  0x5d   :  { %1277 = shalt.err (!%p1274_p11)
}
  0x5e   :  { %84 = dma.hbm_to_vmem [thread:$0]  %s1631_s7, 16, %s82_s18, [#allocation9]  }
  0x5f   :  { %1322 = dma.done.wait [#allocation3], 256  }
  0x60   :  { %1323 = vsyncadd [#allocation3], 4294967040 }
  0x61   :  { %1324 = dma.done.wait [#allocation6], 80  }
  0x62   :  { %1325 = vsyncadd [#allocation6], 4294967216 }
  0x63   :  { %1326 = dma.done.wait [#allocation9], 32  }
  0x64   :  { %1327 = vsyncadd [#allocation9], 4294967264  ;;  %vm126_vm0 = vcmask 1043456   ;;  %vm119_vm1 = vcmask 31744   ;;  %v118_v0 = vld [vmem:[#allocation5] sm:$0xf] }
  0x65   :  { %v116_v1 = vld [vmem:[%s1625_s1] sm:$0xff]  ;;  %v117_v2 = vld [vmem:[%s1625_s1 + $0x8] sm:$0x3]  ;;  %1026 = vmatprep.subr.msk.mxu0 %vm126_vm0, %v118_v0  ;;  %vm212_vm2 = vcmask 80896   ;;  %vm219_vm3 = vcmask 1041408   ;;  %vm1339_vm4 = vmmov 1  }
  0x66   :  { %1028 = vmatprep.mubr.msk.f32.mxu0 %vm119_vm1, %v116_v1  ;;  %1027 = vmatpush3.msk.msra.mxu0 %vm126_vm0, %v118_v0  ;;  %v114_v3 = vld [vmem:[#allocation2] sm:$0xff]  ;;  %v301_v5 = vld [vmem:[%s1628_s4 + $0x8] sm:$0xff]  ;;  %vm1506_vm5 = vmpackc.low %vm219_vm3, %vm1339_vm4  ;;  %vm304_vm6 = vcmask 261120   ;;  %v1340_v41 = vmov 0.0|0.0   ;;  %vm1341_vm7 = vmmov 0   ;;  %v1342_v42 = vmov 0.0  }
  0x67   :  { %1029 = vmatmul.mubr.msk.f32.vlgmr.msra.gmra.mrb[0].mxu0 %vm119_vm1, %v117_v2  ;;  %1035 = vmatprep.mubr.msk.f32.mxu1 %vm212_vm2, %v114_v3  ;;  %v300_v4 = vld [vmem:[%s1628_s4] sm:$0xff]  ;;  %v115_v11 = vld [vmem:[#allocation2 + $0x8] sm:$0x3]  ;;  %v302_v12 = vld [vmem:[%s1628_s4 + $0x10] sm:$0xff]  ;;  %vm644_vm8 = vcmask 254976   ;;  %vm894_vm9 = vcmask 123904  }
  0x68   :  { %v1109_v6 = vpack.c.bf16 %v301_v5, %v300_v4  ;;  %v303_v13 = vld [vmem:[%s1628_s4 + $0x18] sm:$0xff]  ;;  %v962_v15 = vld [vmem:[#allocation7] ss:$0 sm:$0xff]  ;;  %v473_v22 = vld [vmem:[%s1630_s6] sm:$0xff] }
  0x69   :  { %v1113_v14 = vpack.c.bf16 %v303_v13, %v302_v12  ;;  %v474_v23 = vld [vmem:[%s1630_s6 + $0x8] sm:$0xff]  ;;  %v475_v28 = vld [vmem:[%s1630_s6 + $0x10] sm:$0xff]  ;;  %v476_v29 = vld [vmem:[%s1630_s6 + $0x18] sm:$0xff] }
  0x6a   :  { %1110 = vmatprep.subr.bf16.mxu0 %v1109_v6  ;;  %v1123_v27 = vpack.c.bf16 %v474_v23, %v473_v22  ;;  %v1127_v30 = vpack.c.bf16 %v476_v29, %v475_v28  ;;  %v968_v31 = vld [vmem:[#allocation8] ss:$0 sm:$0xff]  ;;  %v723_v43 = vld [vmem:[%s1633_s9] sm:$0xff]  ;;  %v724_v44 = vld [vmem:[%s1633_s9 + $0x8] sm:$0xff] }
  0x6b   :  { %1112 = vmatpush3.bf16.msra.mxu0 %v1109_v6  ;;  %v725_v45 = vld [vmem:[%s1633_s9 + $0x10] sm:$0xff]  ;;  %v1142_v46 = vpack.c.bf16 %v724_v44, %v723_v43  ;;  %v726_v47 = vld [vmem:[%s1633_s9 + $0x18] sm:$0xff]  ;;  %v646_v55 = vld [vmem:[%s1632_s8] sm:$0x3] }
  0x6c   :  { %1114 = vmatprep.subr.bf16.mxu0 %v1113_v14  ;;  %v1145_v48 = vpack.c.bf16 %v726_v47, %v725_v45  ;;  %v974_v49 = vld [vmem:[#allocation10] ss:$0 sm:$0xff]  ;;  %v808_v56 = vld [vmem:[%s1635_s11] sm:$0xff]  ;;  %v809_v57 = vld [vmem:[%s1635_s11 + $0x8] sm:$0xff] }
  0x6d   :  { %v1148_v58 = vpack.c.bf16 %v809_v57, %v808_v56  ;;  %v810_v61 = vld [vmem:[%s1635_s11 + $0x10] sm:$0xff]  ;;  %v811_v62 = vld [vmem:[%s1635_s11 + $0x18] sm:$0xff]  ;;  %v980_v0 = vld [vmem:[%s1634_s10] ss:$0 sm:$0xff]  ;;  %s1343_s10 = smov [#allocation11]  }
  0x6e   :  { %v1151_v63 = vpack.c.bf16 %v811_v62, %v810_v61  ;;  %v982_v5 = vld [vmem:[%s1636_s12] ss:$0 sm:$0xff]  ;;  %s931_s11 = sshll.u32 %s1343_s10, 4  ;;  %s932_s11 = int_to_ptr.vmem [resolvable:$true] %s931_s11 }
  0x6f   :  { %1116 = vmatpush3.bf16.msra.mxu0 %v1113_v14  ;;  %s1278_s6 = scalar_lea.vmem %s932_s11, 256  ;;  %p1283_p13 = scmp.lt.s32.totalorder %s932_s11, %s932_s11 }
  0x70   :  { %p1279_p12 = scmp.ne.s32.totalorder %s932_s11, %s1278_s6  ;;  %p1284_p0 = scmp.lt.s32.totalorder %s1278_s6, %s1278_s6 }
  0x72   :  { %p1285_p1 = por %p1284_p0, %p1283_p13 }
  0x74   :  { %p1286_p2 = pnand %p1285_p1, %p1279_p12 }
 0x13a   :  { %v1030_v7 = vpop.f32.mrb[0].mxu0 }
 0x13b   :  { %v196_v8 = vpop.f32.mrb[1].mxu0 }
 0x13c   :  { %v1103_v10 = vpack.c.bf16 %v1030_v7, %v196_v8 }
 0x13e   :  { %1105 = vmatprep.subr.msk.bf16.mxu1 %vm1506_vm5, %v1103_v10 }
 0x13f   :  { %1108 = vmatpush3.bf16.msk.msra.mxu1 %vm1506_vm5, %v1103_v10 }
 0x142   :  { %1036 = vmatmul.mubr.msk.f32.vlgmr.msra.gmra.mrb[0].mxu1 %vm212_vm2, %v115_v11 }
 0x143   :  { %1053 = vmatprep.mubr.msk.f32.mxu1 %vm212_vm2, %v114_v3 }
 0x215   :  { %v1037_v16 = vpop.f32.mrb[0].mxu1 }
 0x216   :  { %v295_v17 = vadd.f32 %v1037_v16, %v962_v15  ;;  %v289_v18 = vpop.f32.mrb[1].mxu1 }
 0x217   :  { %v290_v19 = vadd.f32 %v962_v15, %v289_v18 }
 0x218   :  { %v299_v21 = vmax.f32 %v295_v17, 0.0 }
 0x219   :  { %v298_v20 = vmax.f32 %v290_v19, 0.0 }
 0x21b   :  { %1046 = vmatprep.mubr.msk.f32.mxu0 %vm304_vm6, %v298_v20 }
 0x21c   :  { %1047 = vmatmul.mubr.msk.f32.vlgmr.msra.gmra.mrb[2].mxu0 %vm304_vm6, %v299_v21 }
 0x21d   :  { %1071 = vmatprep.mubr.msk.f32.mxu0 %vm212_vm2, %v114_v3 }
 0x2ef   :  { %v1048_v24 = vpop.f32.mrb[2].mxu0 }
 0x2f0   :  { %v377_v25 = vpop.f32.mrb[3].mxu0 }
 0x2f1   :  { %v1117_v26 = vpack.c.bf16 %v1048_v24, %v377_v25 }
 0x2f3   :  { %1119 = vmatprep.subr.msk.bf16.mxu1 %vm1506_vm5, %v1117_v26 }
 0x2f4   :  { %1122 = vmatpush3.bf16.msk.msra.mxu1 %vm1506_vm5, %v1117_v26 }
 0x2f5   :  { %1124 = vmatprep.subr.bf16.mxu1 %v1123_v27 }
 0x2f7   :  { %1054 = vmatmul.mubr.msk.f32.vlgmr.msra.gmra.mrb[2].mxu1 %vm212_vm2, %v115_v11 }
 0x2f8   :  { %1126 = vmatpush3.bf16.msra.mxu1 %v1123_v27 }
 0x2f9   :  { %1128 = vmatprep.subr.bf16.mxu1 %v1127_v30 }
 0x2fc   :  { %1130 = vmatpush3.bf16.msra.mxu1 %v1127_v30 }
 0x2fd   :  { %1141 = vmatprep.subr.bf16.mxu1 %v1340_v41 }
 0x3ca   :  { %v1055_v32 = vpop.f32.mrb[2].mxu1 }
 0x3cb   :  { %v468_v33 = vadd.f32 %v1055_v32, %v968_v31  ;;  %v462_v34 = vpop.f32.mrb[3].mxu1 }
 0x3cc   :  { %v463_v35 = vadd.f32 %v968_v31, %v462_v34 }
 0x3cd   :  { %v472_v37 = vmax.f32 %v468_v33, 0.0 }
 0x3ce   :  { %v471_v36 = vmax.f32 %v463_v35, 0.0 }
 0x3d0   :  { %1064 = vmatprep.mubr.msk.f32.mxu1 %vm304_vm6, %v471_v36 }
 0x3d1   :  { %1065 = vmatmul.mubr.msk.f32.vlgmr.msra.gmra.mrb[4].mxu1 %vm304_vm6, %v472_v37 }
 0x3d2   :  { %1089 = vmatprep.mubr.msk.f32.mxu1 %vm1341_vm7, %v1342_v42  ;;  %1143 = vmatpush3.bf16.msra.mxu1 %v1142_v46 }
 0x3d3   :  { %1144 = vmatprep.subr.bf16.mxu1 %v1340_v41 }
 0x3d6   :  { %1146 = vmatpush3.bf16.msra.mxu1 %v1145_v48 }
 0x4a4   :  { %v1066_v38 = vpop.f32.mrb[4].mxu1 }
 0x4a5   :  { %v549_v39 = vpop.f32.mrb[5].mxu1 }
 0x4a6   :  { %v1131_v40 = vpack.c.bf16 %v1066_v38, %v549_v39 }
 0x4a8   :  { %1133 = vmatprep.subr.msk.bf16.mxu0 %vm1506_vm5, %v1131_v40 }
 0x4a9   :  { %1136 = vmatpush3.bf16.msk.msra.mxu0 %vm1506_vm5, %v1131_v40 }
 0x4aa   :  { %1137 = vmatprep.subr.bf16.mxu0 %v1340_v41 }
 0x4ac   :  { %1072 = vmatmul.mubr.msk.f32.vlgmr.msra.gmra.mrb[4].mxu0 %vm212_vm2, %v115_v11 }
 0x4ad   :  { %1078 = vmatprep.mubr.msk.f32.mxu0 %vm1341_vm7, %v1342_v42 }
 0x57f   :  { %v1073_v50 = vpop.f32.mrb[4].mxu0 }
 0x580   :  { %v640_v51 = vadd.f32 %v1073_v50, %v974_v49  ;;  %v634_v52 = vpop.f32.mrb[5].mxu0 }
 0x581   :  { %v635_v53 = vadd.f32 %v974_v49, %v634_v52 }
 0x582   :  { %645 = vst.msk [vmem:[#allocation11 + $0x8] sm:$0x3] %vm644_vm8, %v640_v51 }
 0x583   :  { %v1138_v54 = vpack.c.bf16 %v640_v51, %v635_v53  ;;  %643 = vst.msk [vmem:[#allocation11] sm:$0xff] %vm304_vm6, %v635_v53 }
 0x585   :  { %1140 = vmatpush3.bf16.msk.msra.mxu0 %vm1506_vm5, %v1138_v54 }
 0x586   :  { %1147 = vmatprep.subr.bf16.mxu0 %v1340_v41 }
 0x588   :  { %1079 = vmatmul.mubr.msk.f32.vlgmr.msra.gmra.mrb[6].mxu0 %vm212_vm2, %v646_v55 }
 0x589   :  { %1100 = vmatprep.mubr.msk.f32.mxu0 %vm1341_vm7, %v1342_v42  ;;  %1149 = vmatpush3.bf16.msra.mxu0 %v1148_v58 }
 0x58a   :  { %1150 = vmatprep.subr.bf16.mxu0 %v1340_v41 }
 0x58d   :  { %1152 = vmatpush3.bf16.msra.mxu0 %v1151_v63 }
 0x65b   :  { %v719_v59 = vpop.f32.mrb[6].mxu0 }
 0x65c   :  { %v1080_v60 = vpop.f32.mrb[7].mxu0  ;;  %1090 = vmatmul.mubr.msk.f32.vlgmr.msra.gmra.mrb[6].mxu1 %vm304_vm6, %v719_v59 }
 0x72f   :  { %v803_v1 = vpop.f32.mrb[6].mxu1 }
 0x730   :  { %v804_v2 = vadd.f32 %v980_v0, %v803_v1  ;;  %v1091_v3 = vpop.f32.mrb[7].mxu1 }
 0x732   :  { %v807_v4 = vmax.f32 %v804_v2, 0.0 }
 0x734   :  { %1101 = vmatmul.mubr.msk.f32.vlgmr.msra.gmra.mrb[8].mxu0 %vm304_vm6, %v807_v4 }
 0x807   :  { %v888_v6 = vpop.f32.mrb[8].mxu0 }
 0x808   :  { %v889_v7 = vadd.f32 %v982_v5, %v888_v6  ;;  %v1102_v8 = vpop.f32.mrb[9].mxu0 }
 0x80a   :  { %v895_v9 = vsel %vm894_vm9, %v889_v7, 0.0 }
 0x80b   :  { %896 = vadd.xlane.f32.xlu0 %v895_v9 }
 0x898   :  { %v897_v10 = vpop.xlane.xlu0 %896 }
 0x899   :  { %v899_v11 = vmul.f32 0.0625, %v897_v10 }
 0x89b   :  { %v900_v12 = vsub.f32 %v889_v7, %v899_v11 }
 0x89d   :  { %v901_v13 = vmul.f32 %v900_v12, %v900_v12 }
 0x89f   :  { %v902_v14 = vsel %vm894_vm9, %v901_v13, 0.0 }
 0x8a0   :  { %903 = vadd.xlane.f32.xlu0 %v902_v14 }
 0x8a1   :  { %1289 = shalt.err (!%p1286_p2)
}
 0x8a2   :  { %s1290_s29 = scalar_lea.hbm %s1639_s15, 256 }
 0x8a3   :  { %p1291_p3 = scmp.ne.s32.totalorder %s1639_s15, %s1290_s29  ;;  %p1294_p4 = scmp.lt.u32.totalorder %s1290_s29, %s1639_s15 }
 0x8a5   :  { %p1296_p5 = pnand %p1294_p4, %p1291_p3 }
 0x8a7   :  { %1299 = shalt.err (!%p1296_p5)
}
 0x8a8   :  { %937 = dma.vmem_to_hbm [thread:$0]  %s932_s11, 256, %s1639_s15, [#allocation4], %s1335_s5, %s1335_s5, %s1336_s24   ;;  %vm923_vm10 = vcmask 130048  }
 0x8a9   :  { %v984_v19 = vld [vmem:[%s1637_s13] ss:$0 sm:$0xff]  ;;  %s1344_s25 = smov [#allocation12]  }
 0x8aa   :  { %v985_v21 = vld [vmem:[%s1638_s14] ss:$0 sm:$0xff]  ;;  %s944_s8 = sshll.u32 %s1344_s25, 4  ;;  %s945_s8 = int_to_ptr.vmem [resolvable:$true] %s944_s8 }
 0x8ab   :  { %s1300_s15 = scalar_lea.vmem %s945_s8, 32  ;;  %p1305_p7 = scmp.lt.s32.totalorder %s945_s8, %s945_s8 }
 0x8ac   :  { %p1301_p6 = scmp.ne.s32.totalorder %s945_s8, %s1300_s15  ;;  %p1306_p8 = scmp.lt.s32.totalorder %s1300_s15, %s1300_s15 }
 0x8ae   :  { %p1307_p9 = por %p1306_p8, %p1305_p7 }
 0x8b0   :  { %p1308_p10 = pnand %p1307_p9, %p1301_p6 }
 0x92d   :  { %v904_v15 = vpop.xlane.xlu0 %903 }
 0x92e   :  { %v905_v16 = vmul.f32 0.0625, %v904_v15 }
 0x930   :  { %v906_v17 = vadd.f32 1e-05, %v905_v16 }
 0x932   :  { %1166 = vrsqrt.f32 %v906_v17 }
 0x93c   :  { %v1167_v18 = vpop.eup %1166 }
 0x93d   :  { %v908_v20 = vmul.f32 %v1167_v18, %v900_v12 }
 0x93f   :  { %v915_v22 = vmul.f32 %v984_v19, %v908_v20 }
 0x941   :  { %v922_v23 = vadd.f32 %v985_v21, %v915_v22 }
 0x943   :  { %v924_v24 = vsel %vm923_vm10, %v922_v23, 0.0 }
 0x944   :  { %925 = vst [vmem:[#allocation12] sm:$0x3] %v924_v24 }
 0x945   :  { %1311 = shalt.err (!%p1308_p10)
}
 0x946   :  { %s1312_s24 = scalar_lea.hbm %s1640_s16, 32 }
 0x947   :  { %p1313_p11 = scmp.ne.s32.totalorder %s1640_s16, %s1312_s24  ;;  %p1316_p12 = scmp.lt.u32.totalorder %s1312_s24, %s1640_s16 }
 0x949   :  { %p1318_p13 = pnand %p1316_p12, %p1313_p11 }
 0x94b   :  { %1321 = shalt.err (!%p1318_p13)
}
 0x94c   :  { %947 = dma.vmem_to_hbm [thread:$0]  %s945_s8, 32, %s1640_s16, [#allocation13]  }
 0x94d   :  { %1328 = dma.done.wait [#allocation4], 256  }
 0x94e   :  { %1329 = vsyncadd [#allocation4], 4294967040 }
 0x94f   :  { %1330 = dma.done.wait [#allocation13], 32  }
 0x950   :  { %1331 = vsyncadd [#allocation13], 4294967264 }
 0x951   :  { %954 = vsyncpa [#allocation3], 1 }
 0x952   :  { %955 = vsyncpa [#allocation6], 1 }
 0x953   :  { %956 = vsyncpa [#allocation9], 1 }
 0x954   :  { %957 = vsyncpa [#allocation4], 1 }
 0x955   :  { %958 = vsyncpa [#allocation13], 1 }

</bundles_post_ra>
